<compile_context>
chip_gen: v6e
topology: v6e:2x2x1
jax: 0.10.0
libtpu: 0.0.40
codegen_flags: <defaults>
</compile_context>

<pallas_src>
import functools

import jax
import jax.numpy as jnp
from jax.experimental import pallas as pl
from jax.experimental.pallas import tpu as pltpu

SMOOTHING = 0.1  # module's `smoothing` hyper-parameter (deterministic, in-script)


def _bce_smooth_kernel(pred_ref, tgt_ref, out_ref, acc_ref, *, smoothing):
    """acc_ref: (8, tile_cols) lane-resident partial-sum scratch (per part/core).
    out_ref: tiny (1, 8, 128) per-part block, written only on the last step."""
    ri = pl.program_id(1)
    ci = pl.program_id(2)
    is_first = (ri == 0) & (ci == 0)
    is_last = (ri == pl.num_programs(1) - 1) & (ci == pl.num_programs(2) - 1)

    @pl.when(is_first)
    def _():
        acc_ref[...] = jnp.zeros_like(acc_ref)

    x = pred_ref[...].astype(jnp.float32)
    t = tgt_ref[...].astype(jnp.float32)

    # label smoothing (folded scalar constants, VPU elementwise)
    st = t * (1.0 - smoothing) + smoothing * 0.5

    # stable BCE-with-logits (VPU elementwise + EUP exp/log)
    loss = jnp.maximum(x, 0.0) - x * st + jnp.log1p(jnp.exp(-jnp.abs(x)))

    # Reduce only along sublane groups of 8: pure vreg-wise VPU adds, keeps the
    # running sum lane-resident (no per-step cross-lane XLU reduce).
    r, c = loss.shape
    acc_ref[...] += loss.reshape(r // 8, 8, c).sum(axis=0)

    # Fused epilogue: single cross-lane reduce, tiny per-part writeback.
    @pl.when(is_last)
    def _():
        total = jnp.sum(acc_ref[...])
        out_ref[...] = jnp.full(out_ref.shape, total, dtype=out_ref.dtype)


def _vmem_capacity_bytes():
    try:
        return int(pltpu.get_tpu_info().vmem_capacity_bytes)
    except Exception:
        return 64 << 20  # conservative fallback: v7x per-TensorCore VMEM


def _largest_tile_dim(total, unit, max_size):
    """Largest multiple of `unit` that divides `total` and is <= max(max_size, unit)."""
    limit = max(unit, min(total, max_size))
    best, cand = unit, unit
    while cand <= limit:
        if total % cand == 0:
            best = cand
        cand += unit
    return best


def _pick_tile(rows, cols, row_unit, bytes_per_elem, budget_bytes):
    """Pick (tile_rows, tile_cols): prefer lane-dense full-width tiles; fall back to
    column tiling for very wide rows so the block stays multi-MiB."""
    full_row_bytes = cols * bytes_per_elem
    if row_unit * full_row_bytes <= budget_bytes:
        tile_cols = cols
        tile_rows = _largest_tile_dim(rows, row_unit, budget_bytes // full_row_bytes)
    else:
        tile_rows = row_unit
        tile_cols = _largest_tile_dim(cols, 128,
                                      budget_bytes // (row_unit * bytes_per_elem))
    return tile_rows, tile_cols


def label_smoothing_bce_loss(pred, target, smoothing=SMOOTHING, *,
                             max_block_bytes=None):
    assert pred.shape == target.shape and pred.ndim == 2
    B, N = pred.shape

    isz_p = jnp.dtype(pred.dtype).itemsize
    isz_t = jnp.dtype(target.dtype).itemsize
    itemsize = max(isz_p, isz_t)
    # sublane granularity for the narrowest input dtype (f32 -> 8, bf16 -> 16)
    row_unit = max(8, 32 // min(isz_p, isz_t))
    assert B % row_unit == 0 and N % 128 == 0, \
        "shapes must tile to TPU (sublane, 128) vregs for the input dtypes"
    # TODO(synk): producer-side bf16 pred/target would halve HBM traffic in this
    # bandwidth-bound kernel (row_unit already handles the (16,128) tile); the
    # test below keeps the module's f32 interface.

    vmem_cap = _vmem_capacity_bytes()
    if max_block_bytes is None:
        # generation-specific per-input block budget:
        # v5e/v6e (128 MiB VMEM) -> ~10 MiB slabs; v7x (64 MiB / TC) -> ~5 MiB.
        max_block_bytes = (10 << 20) if vmem_cap >= (96 << 20) else (5 << 20)

    # 2-way "parallel" leading axis so both v7x TensorCores get work (serial &
    # harmless on single-TC v5e/v6e). Prefer splitting rows; for odd row-group
    # counts split the lane dimension instead so each core still gets big tiles.
    rows_units, cols_units = B // row_unit, N // 128
    if rows_units % 2 == 0:
        num_parts, part_axis = 2, 0
    elif cols_units % 2 == 0:
        num_parts, part_axis = 2, 1
    else:
        num_parts, part_axis = 1, 0

    rows_per_part = B // (num_parts if part_axis == 0 else 1)
    cols_per_part = N // (num_parts if part_axis == 1 else 1)

    tile_rows, tile_cols = _pick_tile(rows_per_part, cols_per_part, row_unit,
                                      itemsize, max_block_bytes)
    row_steps = rows_per_part // tile_rows
    col_steps = cols_per_part // tile_cols

    # VMEM: 2 inputs x 2 pipeline buffers + f32 elementwise temporaries +
    # resident accumulator + generous headroom; capped below physical VMEM.
    tile_elems = tile_rows * tile_cols
    pipeline_bytes = 2 * tile_elems * (isz_p + isz_t)
    temp_bytes = 4 * tile_elems * 4
    acc_bytes = 8 * tile_cols * 4
    vmem_need = pipeline_bytes + temp_bytes + acc_bytes + (4 << 20)
    vmem_limit = int(min(vmem_cap - (8 << 20), vmem_need + (16 << 20)))

    if part_axis == 0:
        in_map = lambda c, ri, ci: (c * row_steps + ri, ci)
    else:
        in_map = lambda c, ri, ci: (ri, c * col_steps + ci)

    kernel = functools.partial(_bce_smooth_kernel, smoothing=float(smoothing))

    partials = pl.pallas_call(
        kernel,
        out_shape=jax.ShapeDtypeStruct((num_parts, 8, 128), jnp.float32),
        grid_spec=pltpu.PrefetchScalarGridSpec(
            num_scalar_prefetch=0,
            grid=(num_parts, row_steps, col_steps),
            in_specs=[
                pl.BlockSpec((tile_rows, tile_cols), in_map),
                pl.BlockSpec((tile_rows, tile_cols), in_map),
            ],
            out_specs=pl.BlockSpec((1, 8, 128), lambda c, ri, ci: (c, 0, 0)),
            scratch_shapes=[pltpu.VMEM((8, tile_cols), jnp.float32)],
        ),
        compiler_params=pltpu.CompilerParams(
            dimension_semantics=("parallel", "arbitrary", "arbitrary"),
            vmem_limit_bytes=vmem_limit,
        ),
    )(pred, target)

    # Heavy reduction already fused into the kernel; this is a num_parts-element sum.
    return jnp.sum(partials[:, 0, 0]) * (1.0 / float(B * N))


def _reference(pred, target, smoothing=SMOOTHING):
    st = target * (1.0 - smoothing) + smoothing * 0.5
    loss = jnp.maximum(pred, 0.0) - pred * st + jnp.log1p(jnp.exp(-jnp.abs(pred)))
    return jnp.mean(loss)


if __name__ == "__main__":
    key = jax.random.PRNGKey(0)
    k1, k2 = jax.random.split(key)

    B, N = 16, 256  # small (batch, features) logits for multi-label binary targets
    pred = jax.random.normal(k1, (B, N), dtype=jnp.float32) * 2.0
    target = jax.random.bernoulli(k2, 0.3, (B, N)).astype(jnp.float32)

    loss = jax.block_until_ready(label_smoothing_bce_loss(pred, target))
    ref = jax.block_until_ready(_reference(pred, target))
    assert jnp.allclose(loss, ref, rtol=1e-5, atol=1e-5), (loss, ref)

    print("KERNEL_OK")
</pallas_src>

<mosaic_0001>
module attributes {stable_mosaic.version = 11 : i64} {
  func.func @_bce_smooth_kernel(%arg0: i32, %arg1: i32, %arg2: i32, %arg3: memref<8x256xf32, #tpu.memory_space<vmem>>, %arg4: memref<8x256xf32, #tpu.memory_space<vmem>>, %arg5: memref<1x8x128xf32, #tpu.memory_space<vmem>>, %arg6: memref<8x256xf32, #tpu.memory_space<vmem>>) attributes {dimension_semantics = [#tpu.dimension_semantics<parallel>, #tpu.dimension_semantics<arbitrary>, #tpu.dimension_semantics<arbitrary>], iteration_bounds = array<i64: 2, 1, 1>, scalar_prefetch = 0 : i64, scratch_operands = 1 : i64, tpu.core_type = #tpu.core_type<tc>, window_params = [{transform_indices = @transform_0, window_bounds = array<i64: 8, 256>}, {transform_indices = @transform_1, window_bounds = array<i64: 8, 256>}, {transform_indices = @transform_2, window_bounds = array<i64: 1, 8, 128>}]} {
    %c0_i32 = arith.constant 0 : i32
    %0 = arith.cmpi eq, %arg1, %c0_i32 : i32
    %c0_i32_0 = arith.constant 0 : i32
    %1 = arith.cmpi eq, %arg2, %c0_i32_0 : i32
    %2 = arith.andi %0, %1 : i1
    %c0_i32_1 = arith.constant 0 : i32
    %3 = arith.cmpi eq, %arg1, %c0_i32_1 : i32
    %c0_i32_2 = arith.constant 0 : i32
    %4 = arith.cmpi eq, %arg2, %c0_i32_2 : i32
    %5 = arith.andi %3, %4 : i1
    %6 = arith.extui %2 : i1 to i32
    %c0_i32_3 = arith.constant 0 : i32
    %7 = arith.cmpi ne, %6, %c0_i32_3 : i32
    scf.if %7 {
      %cst_16 = arith.constant 0.000000e+00 : f32
      %31 = vector.broadcast %cst_16 : f32 to vector<8x256xf32>
      %c0_17 = arith.constant 0 : index
      %c0_18 = arith.constant 0 : index
      %32 = vector.load %arg6[%c0_17, %c0_18] : memref<8x256xf32, #tpu.memory_space<vmem>>, vector<8x256xf32>
      tpu.vector_store %arg6[%c0_17, %c0_18], %31 {strides = array<i32>} : memref<8x256xf32, #tpu.memory_space<vmem>>, vector<8x256xf32>,
    } else {
    }
    %c0 = arith.constant 0 : index
    %c0_4 = arith.constant 0 : index
    %8 = vector.load %arg3[%c0, %c0_4] : memref<8x256xf32, #tpu.memory_space<vmem>>, vector<8x256xf32>
    %c0_5 = arith.constant 0 : index
    %c0_6 = arith.constant 0 : index
    %9 = vector.load %arg4[%c0_5, %c0_6] : memref<8x256xf32, #tpu.memory_space<vmem>>, vector<8x256xf32>
    %cst = arith.constant 0.899999976 : f32
    %10 = vector.broadcast %cst : f32 to vector<8x256xf32>
    %11 = arith.mulf %9, %10 : vector<8x256xf32>
    %cst_7 = arith.constant 5.000000e-02 : f32
    %12 = vector.broadcast %cst_7 : f32 to vector<8x256xf32>
    %13 = arith.addf %11, %12 : vector<8x256xf32>
    %cst_8 = arith.constant 0.000000e+00 : f32
    %14 = vector.broadcast %cst_8 : f32 to vector<8x256xf32>
    %15 = arith.maximumf %8, %14 : vector<8x256xf32>
    %16 = arith.mulf %8, %13 : vector<8x256xf32>
    %17 = arith.subf %15, %16 : vector<8x256xf32>
    %18 = math.absf %8 : vector<8x256xf32>
    %cst_9 = arith.constant 0.000000e+00 : f32
    %19 = vector.broadcast %cst_9 : f32 to vector<8x256xf32>
    %20 = arith.subf %19, %18 : vector<8x256xf32>
    %21 = math.exp %20 : vector<8x256xf32>
    %22 = math.log1p %21 : vector<8x256xf32>
    %23 = arith.addf %17, %22 : vector<8x256xf32>
    %c0_10 = arith.constant 0 : index
    %c0_11 = arith.constant 0 : index
    %24 = vector.load %arg6[%c0_10, %c0_11] : memref<8x256xf32, #tpu.memory_space<vmem>>, vector<8x256xf32>
    %25 = vector.shape_cast %23 : vector<8x256xf32> to vector<1x8x256xf32>
    %cst_12 = arith.constant dense<0.000000e+00> : vector<8x256xf32>
    %26 = vector.multi_reduction <add>, %25, %cst_12 [0] : vector<1x8x256xf32> to vector<8x256xf32>
    %27 = arith.addf %24, %26 : vector<8x256xf32>
    %c0_13 = arith.constant 0 : index
    %c0_14 = arith.constant 0 : index
    %28 = vector.load %arg6[%c0_13, %c0_14] : memref<8x256xf32, #tpu.memory_space<vmem>>, vector<8x256xf32>
    tpu.vector_store %arg6[%c0_13, %c0_14], %27 {strides = array<i32>} : memref<8x256xf32, #tpu.memory_space<vmem>>, vector<8x256xf32>,
    %29 = arith.extui %5 : i1 to i32
    %c0_i32_15 = arith.constant 0 : i32
    %30 = arith.cmpi ne, %29, %c0_i32_15 : i32
    scf.if %30 {
      %c0_16 = arith.constant 0 : index
      %c0_17 = arith.constant 0 : index
      %31 = vector.load %arg6[%c0_16, %c0_17] : memref<8x256xf32, #tpu.memory_space<vmem>>, vector<8x256xf32>
      %32 = vector.shape_cast %31 : vector<8x256xf32> to vector<1x8x256xf32>
      %cst_18 = arith.constant dense<0.000000e+00> : vector<1xf32>
      %33 = vector.multi_reduction <add>, %32, %cst_18 [1, 2] : vector<1x8x256xf32> to vector<1xf32>
      %34 = vector.shape_cast %33 : vector<1xf32> to vector<1x1x1xf32>
      %35 = vector.extract %34[0, 0, 0] : f32 from vector<1x1x1xf32>
      %36 = vector.broadcast %35 : f32 to vector<1x8x128xf32>
      %c0_19 = arith.constant 0 : index
      %c0_20 = arith.constant 0 : index
      %c0_21 = arith.constant 0 : index
      %37 = vector.load %arg5[%c0_19, %c0_20, %c0_21] : memref<1x8x128xf32, #tpu.memory_space<vmem>>, vector<1x8x128xf32>
      tpu.vector_store %arg5[%c0_19, %c0_20, %c0_21], %36 {strides = array<i32>} : memref<1x8x128xf32, #tpu.memory_space<vmem>>, vector<1x8x128xf32>,
    } else {
    }
    return
  }
  func.func @transform_0(%arg0: i32, %arg1: i32, %arg2: i32) -> (i32, i32) {
    %c1_i32 = arith.constant 1 : i32
    %0 = arith.muli %arg0, %c1_i32 : i32
    %1 = arith.addi %0, %arg1 : i32
    %c0_i32 = arith.constant 0 : i32
    return %1, %arg2 : i32, i32
  }
  func.func @transform_1(%arg0: i32, %arg1: i32, %arg2: i32) -> (i32, i32) {
    %c1_i32 = arith.constant 1 : i32
    %0 = arith.muli %arg0, %c1_i32 : i32
    %1 = arith.addi %0, %arg1 : i32
    %c0_i32 = arith.constant 0 : i32
    return %1, %arg2 : i32, i32
  }
  func.func @transform_2(%arg0: i32, %arg1: i32, %arg2: i32) -> (i32, i32, i32) {
    %c0_i32 = arith.constant 0 : i32
    %c0_i32_0 = arith.constant 0 : i32
    %c0_i32_1 = arith.constant 0 : i32
    return %arg0, %c0_i32, %c0_i32_0 : i32, i32, i32
  }
}

</mosaic_0001>

<bundles_post_ra>
// kernel: tpu_custom_call.1
= control target key start
LH: loop header
LB: loop body
LE: loop exit
PB: predicated region body
PF: predicated region fallthrough
CT: control target
= control target key end

     0   :  { %7 = vsyncpa [#allocation4], 0  ;;  %s860_s0 = inlined_call_operand.hbm [shape: f32[16,256], index: 0, kind: input, shape index: {}]   ;;  %s861_s1 = inlined_call_operand.hbm [shape: f32[16,256], index: 1, kind: input, shape index: {}]   ;;  %s862_s2 = inlined_call_operand.hbm [shape: f32[2,8,128], index: 2, kind: output, shape index: {}]  }
   0x1   :  { %9 = vsyncpa [#allocation4 + $0x1], 0 }
   0x2   :  { %10 = vsyncpa [#allocation7], 0 }
   0x3   :  { %12 = vsyncpa [#allocation7 + $0x1], 0 }
   0x4   :  { %13 = vsyncpa [#allocation5], 0 }
   0x5   :  { %15 = vsyncpa [#allocation5 + $0x1], 0  ;;  %s692_s9 = smov 0   ;;  %s694_s10 = smov 0  }
   0x6   :  { %s696_s11 = smov 0   ;;  %s698_s12 = smov 0  }
   0x7   :  { %s700_s13 = smov 0   ;;  %s702_s14 = smov 0  }
   0x8 LB: > { %s435_s15 = sadd.s32 4294967295, %s672_s14   ;;  %s436_s16 = sadd.s32 4294967294, %s672_s14   ;;  %s672_s14 = sphi %s702_s14, %s21_s14   ;;  %s668_s13 = sphi %s700_s13, %s874_s13   ;;  %s664_s12 = sphi %s698_s12, %s873_s12   ;;  %s660_s11 = sphi %s696_s11, %s872_s11   ;;  %s656_s10 = sphi %s694_s10, %s871_s10   ;;  %s652_s9 = sphi %s692_s9, %s870_s9  }
   0x9   : > { %s40_s17 = sadd.s32 1, %s668_s13  ;;  %s51_s18 = sadd.s32 1, %s660_s11 }
   0xa   : > { %p42_p0 = scmp.ge.s32.totalorder %s40_s17, 2  ;;  %p58_p1 = scmp.ne.s32.totalorder %s660_s11, %s656_s10 }
   0xb   : > { %p59_p2 = scmp.eq.s32.totalorder %s672_s14, 0  ;;  %p64_p3 = scmp.ne.s32.totalorder %s656_s10, %s652_s9 }
   0xc   : > { %s876_s17 = smov (%p42_p0, %s40_s17), 0  ;;  %p65_p5 = scmp.eq.s32.totalorder %s435_s15, 0 }
   0xd   : > { %p733_p4 = por %p59_p2, %p58_p1  ;;  %s46_s20 = ssub.s32 %s668_s13, %s876_s17 }
   0xe   : > { %p118_p6 = scmp.eq.s32.totalorder %s435_s15, 1  ;;  %p49_p7 = scmp.eq.s32.totalorder %s46_s20, 0 }
   0xf   : > { %p739_p8 = por %p65_p5, %p64_p3  ;;  %p124_p10 = scmp.eq.s32.totalorder %s436_s16, 1 }
  0x10   : > { %p743_p9 = por %p118_p6, %p58_p1  ;;  %p474_p13 = scmp.lt.s32.totalorder %s672_s14, 2 }
  0x11   : > { %s748_s23 = scalar_select %p49_p7, %s660_s11, %s51_s18  }
  0x12   : > { %p750_p11 = por %p124_p10, %p64_p3  ;;  %s757_s25 = sand.u32 1, %s660_s11  }
  0x13   : > { %s439_s26 = sshll.u32 %s757_s25, 4  ;;  %s453_s27 = sshll.u32 %s668_s13, 8 }
  0x14   : > { %s157_s30 = scalar_lea.hbm %s860_s0, %s453_s27  ;;  %s148_s3 = scalar_lea.vmem [#allocation3], %s439_s26 }
  0x15   : > { %s159_s4 = sshll.u32 %s148_s3, 4  ;;  %p766_p0 = pnand %p474_p13, %p733_p4  ;;  %s160_s4 = int_to_ptr.vmem [resolvable:$true] %s159_s4 }
  0x16   : > { %p445_p1 = scmp.ge.s32.totalorder %s672_s14, 1  ;;  %p186_p2 = scmp.lt.s32.totalorder %s672_s14, 3 }
  0x17   : > { %s145_s6 = scalar_lea.sflag [#allocation4], %s757_s25  ;;  %p534_p3 = pneg %p766_p0 }
  0x18   : > { %s545_s7 = scalar_lea.vmem %s160_s4, 256  ;;  %s674_s8 = smov [#allocation3]  }
  0x19   : > { %p546_p5 = scmp.ne.s32.totalorder %s160_s4, %s545_s7  ;;  %s550_s15 = sshll.u32 %s674_s8, 4  ;;  %s551_s15 = int_to_ptr.vmem [resolvable:$false] %s550_s15 }
  0x1a   : > { %s552_s16 = scalar_lea.vmem %s551_s15, 512  ;;  %p553_p4 = scmp.lt.s32.totalorder %s160_s4, %s551_s15 }
  0x1b   : > { %p548_p6 = pnand %p546_p5, %p534_p3  ;;  %p554_p10 = scmp.lt.s32.totalorder %s552_s16, %s545_s7 }
  0x1d   : > { %p549_p7 = pneg %p548_p6  ;;  %p555_p13 = por %p554_p10, %p553_p4 }
  0x1f   : > { %p556_p12 = pnand %p555_p13, %p549_p7 }
  0x21   : > { %559 = shalt.err (!%p556_p12)
}
  0x22   : > { %466 = dma.hbm_to_vmem [thread:$0]  (!%p766_p0), %s157_s30, 256, %s160_s4, %s145_s6  }
  0x23   : > { %p784_p5 = pnand %p445_p1, %p186_p2  ;;  %s179_s28 = scalar_lea.hbm %s861_s1, %s453_s27 }
  0x24   : > { %s170_s29 = scalar_lea.vmem [#allocation6], %s439_s26  ;;  %s167_s7 = scalar_lea.sflag [#allocation7], %s757_s25 }
  0x25   : > { %s181_s3 = sshll.u32 %s170_s29, 4  ;;  %s675_s30 = smov [#allocation6]   ;;  %s182_s3 = int_to_ptr.vmem [resolvable:$true] %s181_s3 }
  0x26   : > { %s573_s8 = scalar_lea.vmem %s182_s3, 256  ;;  %s578_s4 = sshll.u32 %s675_s30, 4  ;;  %s579_s4 = int_to_ptr.vmem [resolvable:$false] %s578_s4 }
  0x27   : > { %p574_p12 = scmp.ne.s32.totalorder %s182_s3, %s573_s8  ;;  %s580_s6 = scalar_lea.vmem %s579_s4, 512 }
  0x28   : > { %p581_p1 = scmp.lt.s32.totalorder %s182_s3, %s579_s4  ;;  %p582_p2 = scmp.lt.s32.totalorder %s580_s6, %s573_s8 }
  0x29   : > { %p576_p6 = pnand %p574_p12, %p534_p3 }
  0x2a   : > { %p583_p4 = por %p582_p2, %p581_p1 }
  0x2b   : > { %p577_p7 = pneg %p576_p6 }
  0x2d   : > { %p584_p10 = pnand %p583_p4, %p577_p7 }
  0x2f   : > { %587 = shalt.err (!%p584_p10)
}
  0x30   : > { %469 = dma.hbm_to_vmem [thread:$0]  (!%p766_p0), %s179_s28, 256, %s182_s3, %s167_s7  }
  0x31   : > { %190 = sbr.rel (%p784_p5) target bundleno = 316 (0x13c), region = 28  ;;  %s800_s25 = sand.u32 (!%p784_p5), 1, %s656_s10  }
  0x32   : > { %s446_s26 = sshll.u32 (!%p784_p5), %s800_s25, 4  ;;  %s193_s27 = scalar_lea.sflag (!%p784_p5), [#allocation4], %s800_s25 }
  0x33   : > { %s196_s15 = scalar_lea.vmem (!%p784_p5), [#allocation3], %s446_s26 }
  0x36   : > { %639 = dma.done.wait (%p739_p8), %s193_s27, 256  }
  0x37   : > { %641 = vsyncadd (%p739_p8), %s193_s27, 4294967040  ;;  %s202_s5 = scalar_lea.sflag [#allocation7], %s800_s25  ;;  %s205_s16 = scalar_lea.vmem [#allocation6], %s446_s26 }
  0x38   : > { %643 = dma.done.wait (%p739_p8), %s202_s5, 256  }
  0x39   : > { %645 = vsyncadd (%p739_p8), %s202_s5, 4294967040  ;;  %v243_v0 = vld [vmem:[%s196_s15] sm:$0xff]  ;;  %v244_v1 = vld [vmem:[%s196_s15 + $0x8] sm:$0xff]  ;;  %s448_s21 = sshll.u32 %s800_s25, 3  ;;  %s450_s20 = sshll.u32 %s664_s12, 7 }
  0x3a   : > { %v257_v2 = vand.u32 2147483647, %v243_v0  ;;  %v258_v3 = vand.u32 2147483647, %v244_v1  ;;  %v245_v10 = vld [vmem:[%s205_s16] sm:$0xff]  ;;  %v246_v12 = vld [vmem:[%s205_s16 + $0x8] sm:$0xff]  ;;  %s321_s7 = scalar_lea.hbm %s862_s2, %s450_s20 }
  0x3b   : > { %v247_v14 = vmul.f32 0.9, %v245_v10  ;;  %v248_v15 = vmul.f32 0.9, %v246_v12  ;;  %v251_v21 = vmax.f32 %v243_v0, 0.0  ;;  %v252_v25 = vmax.f32 %v244_v1, 0.0 }
  0x3c   : > { %v259_v4 = vsub.f32 0.0, %v257_v2  ;;  %v260_v5 = vsub.f32 0.0, %v258_v3  ;;  %s230_s18 = scalar_lea.vmem [#allocation8], %s448_s21  ;;  %s310_s8 = scalar_lea.sflag [#allocation5], %s800_s25 }
  0x3d   : > { %v249_v17 = vadd.f32 0.05, %v247_v14  ;;  %v250_v19 = vadd.f32 0.05, %v248_v15  ;;  %s323_s19 = sshll.u32 %s230_s18, 4  ;;  %s676_s4 = smov [#allocation8]   ;;  %s815_s19 = int_to_ptr.vmem [resolvable:$true] %s323_s19 }
  0x3e   : > { %v261_v6 = vmul.f32 1.442695, %v259_v4  ;;  %v263_v7 = vmul.f32 1.442695, %v260_v5  ;;  %s588_s30 = scalar_lea.vmem %s815_s19, 128  ;;  %s592_s12 = sshll.u32 %s676_s4, 4  ;;  %s593_s12 = int_to_ptr.vmem [resolvable:$false] %s592_s12 }
  0x3f   : > { %v253_v22 = vmul.f32 %v249_v17, %v243_v0  ;;  %v254_v26 = vmul.f32 %v250_v19, %v244_v1  ;;  %p589_p8 = scmp.ne.s32.totalorder %s815_s19, %s588_s30  ;;  %s594_s6 = scalar_lea.vmem %s593_s12, 256 }
  0x40   : > { %524 = vpow2.f32 %v261_v6  ;;  %p595_p13 = scmp.lt.s32.totalorder %s815_s19, %s593_s12  ;;  %p596_p5 = scmp.lt.s32.totalorder %s594_s6, %s588_s30 }
  0x41   : > { %526 = vpow2.f32 %v263_v7  ;;  %v255_v30 = vsub.f32 %v251_v21, %v253_v22  ;;  %v256_v33 = vsub.f32 %v252_v25, %v254_v26  ;;  %p590_p0 = pnand %p589_p8, %p743_p9 }
  0x42   : > { %p597_p12 = por %p596_p5, %p595_p13 }
  0x43   : > { %p591_p3 = pneg %p590_p0 }
  0x45   : > { %p598_p6 = pnand %p597_p12, %p591_p3 }
  0x4d   : > { %v525_v8 = vpop.eup %524 }
  0x4e   : > { %v527_v9 = vpop.eup %526  ;;  %v265_v11 = vadd.f32 1.0, %v525_v8  ;;  %v268_v16 = vmul.f32 -0.5, %v525_v8  ;;  %v271_v23 = vand.u32 2147483647, %v525_v8 }
  0x4f   : > { %v274_v13 = vadd.f32 1.0, %v527_v9  ;;  %v277_v18 = vmul.f32 -0.5, %v527_v9  ;;  %v280_v27 = vand.u32 2147483647, %v527_v9 }
  0x50   : > { %528 = vlog2.f32 %v265_v11  ;;  %v269_v20 = vadd.f32 1.0, %v268_v16  ;;  %vm272_vm0 = vcmp.lt.f32.partialorder %v271_v23, 0.0004427343 }
  0x51   : > { %530 = vlog2.f32 %v274_v13  ;;  %v278_v24 = vadd.f32 1.0, %v277_v18  ;;  %vm281_vm1 = vcmp.lt.f32.partialorder %v280_v27, 0.0004427343 }
  0x52   : > { %v270_v28 = vmul.f32 %v525_v8, %v269_v20 }
  0x53   : > { %v279_v31 = vmul.f32 %v527_v9, %v278_v24 }
  0x5d   : > { %v529_v29 = vpop.eup %528 }
  0x5e   : > { %v531_v32 = vpop.eup %530  ;;  %v267_v34 = vmul.f32 0.6931472, %v529_v29 }
  0x5f   : > { %v276_v35 = vmul.f32 0.6931472, %v531_v32 }
  0x60   : > { %v273_v36 = vsel %vm272_vm0, %v270_v28, %v267_v34 }
  0x61   : > { %v282_v37 = vsel %vm281_vm1, %v279_v31, %v276_v35  ;;  %v283_v38 = vadd.f32 %v273_v36, %v255_v30 }
  0x62   : > { %v284_v39 = vadd.f32 %v282_v37, %v256_v33 }
  0x64   : > { %v297_v40 = vadd.f32 %v284_v39, %v283_v38 }
  0x66   : > { %298 = vadd.xlane.f32.xlu0 %v297_v40 }
  0xef   : > { %v299_v41 = vpop.xlane.xlu0 %298 }
  0xf0   : > { %v300_v42 = vrot.slane %v299_v41, 4 }
  0xf2   : > { %v301_v43 = vadd.f32 %v300_v42, %v299_v41 }
  0xf4   : > { %v302_v44 = vrot.slane %v301_v43, 2 }
  0xf6   : > { %v303_v45 = vadd.f32 %v302_v44, %v301_v43 }
  0xf8   : > { %v304_v46 = vrot.slane %v303_v45, 1 }
  0xfa   : > { %v305_v47 = vadd.f32 %v304_v46, %v303_v45 }
  0xfc   : > { %455 = vpush %v305_v47 }
 0x12d   : > { %s456_s28 = spop %455 }
 0x12e   : > { %v307_v48 = vstv %s456_s28 }
 0x12f   : > { %308 = vst [vmem:[%s230_s18] sm:$0xff] %v307_v48 }
 0x130   : > { %601 = shalt.err (!%p598_p6)
}
 0x131   : > { %s602_s26 = scalar_lea.hbm %s321_s7, 128  ;;  %s606_s15 = scalar_lea.hbm %s862_s2, 256 }
 0x132   : > { %p603_p7 = scmp.ne.s32.totalorder %s321_s7, %s602_s26  ;;  %p607_p4 = scmp.lt.s32.totalorder %s321_s7, %s862_s2 }
 0x133   : > { %p608_p10 = scmp.lt.s32.totalorder %s606_s15, %s602_s26 }
 0x134   : > { %p604_p1 = pnand %p603_p7, %p743_p9 }
 0x135   : > { %p609_p8 = por %p608_p10, %p607_p4 }
 0x136   : > { %p605_p2 = pneg %p604_p1 }
 0x138   : > { %p610_p0 = pnand %p609_p8, %p605_p2 }
 0x13a   : > { %613 = shalt.err (!%p610_p0)
}
 0x13b   : > { %461 = dma.vmem_to_hbm [thread:$0]  (%p743_p9), %s815_s19, 128, %s321_s7, %s310_s8  }
 0x13c PF: > { %s335_s21 = sand.u32 1, %s652_s9   ;;  %p869_p3 = scmp.ge.s32.totalorder %s672_s14, 2 }
 0x13d   : > { %s336_s18 = scalar_lea.sflag [#allocation5], %s335_s21 }
 0x13e   : > { %p471_p13 = pnand %p869_p3, %p750_p11 }
 0x140   : > { %p472_p5 = pneg %p471_p13 }
 0x142   : > { %647 = dma.done.wait (%p472_p5), %s336_s18, 128  }
 0x143   : > { %649 = vsyncadd (%p472_p5), %s336_s18, 4294967168  ;;  %s21_s14 = sadd.s32 1, %s672_s14   ;;  %s870_s9 = smov %s656_s10 }
 0x144   : > { %p18_p12 = scmp.ge.s32.totalorder %s21_s14, 4   ;;  %s871_s10 = smov %s660_s11 }
 0x145   : > { %s872_s11 = smov %s748_s23  ;;  %s873_s12 = smov %s668_s13 }
 0x146   : > { %s874_s13 = smov %s876_s17  ;;  %20 = sbr.rel (!%p18_p12) target bundleno = 8 (0x8), region = 94 }
 0x14b   :  { %341 = vsyncpa [#allocation4], 1 }
 0x14c   :  { %343 = vsyncpa [#allocation4 + $0x1], 1 }
 0x14d   :  { %344 = vsyncpa [#allocation7], 1 }
 0x14e   :  { %346 = vsyncpa [#allocation7 + $0x1], 1 }
 0x14f   :  { %347 = vsyncpa [#allocation5], 1 }
 0x150   :  { %349 = vsyncpa [#allocation5 + $0x1], 1 }

</bundles_post_ra>
